<compile_context>
chip_gen: v6e
topology: v6e:2x2x1
jax: 0.10.0
libtpu: 0.0.40
codegen_flags: <defaults>
</compile_context>

<pallas_src>
import functools
import math

import jax
import jax.numpy as jnp
from jax import lax
from jax.experimental import pallas as pl
from jax.experimental.pallas import tpu as pltpu


def _mhsa_kernel(xq_ref, xkv_ref, wq_ref, bq_ref, wkv_ref, bkv_ref,
                 wo_ref, bo_ref, out_ref, attn_ref, acc_ref, *,
                 causal, compute_dtype, tq, approx_reciprocal):
    qi = pl.program_id(1)
    h = pl.program_id(2)
    num_heads = pl.num_programs(2)

    xq = xq_ref[0]       # (Tq, D)  query-tile rows of x
    xkv = xkv_ref[0]     # (S,  D)  full x for keys / values

    def mm(a, b):
        return lax.dot_general(
            a.astype(compute_dtype), b.astype(compute_dtype),
            dimension_numbers=(((1,), (0,)), ((), ())),
            preferred_element_type=jnp.float32)

    # --- projections for head h (1/sqrt(dk) already folded into Wq/bq;
    #     K and V fused into a single N = 2*dk matmul) ---
    q = mm(xq, wq_ref[h]) + bq_ref[h]        # (Tq, dk), pre-scaled
    kv = mm(xkv, wkv_ref[h]) + bkv_ref[h]    # (S, 2*dk)
    dk = q.shape[-1]
    k = kv[:, :dk]
    v = kv[:, dk:]

    # scores = q @ k^T  (contract dk directly).
    # TODO(synk): confirm from the bundle dump that Mosaic does not insert a
    # per-step vxpose of k here; if it does and XLU is binding, pre-transpose.
    scores = lax.dot_general(
        q.astype(compute_dtype), k.astype(compute_dtype),
        dimension_numbers=(((1,), (1,)), ((), ())),
        preferred_element_type=jnp.float32)  # (Tq, S)

    if causal:
        row = lax.broadcasted_iota(jnp.int32, scores.shape, 0) + qi * tq
        col = lax.broadcasted_iota(jnp.int32, scores.shape, 1)
        # Large finite negative instead of -inf: stays NaN-free if this kernel
        # is ever extended with padding masks (fully masked rows).
        scores = jnp.where(col <= row, scores, -1e30)

    # --- softmax (multiply-by-reciprocal; approx=True -> EUP vrcp slot) ---
    m = jnp.max(scores, axis=-1, keepdims=True)
    e = jnp.exp(scores - m)
    denom = jnp.sum(e, axis=-1, keepdims=True)
    p = e * pl.reciprocal(denom, approx=approx_reciprocal)   # (Tq, S)

    attn_ref[0, 0] = p.astype(attn_ref.dtype)

    # --- weighted values + this head's slice of the output projection ---
    # TODO(synk): K=dk underfills the MXU contraction dim; a fully deferred
    # (Tq,D)@(D,D) projection would fix that but needs a head-concat relayout.
    o = mm(p, v)                  # (Tq, dk)
    y = mm(o, wo_ref[h])          # (Tq, D)  head h's contribution

    @pl.when(h == 0)
    def _init():
        acc_ref[...] = y          # f32 accumulation (not out dtype)

    @pl.when(h != 0)
    def _accumulate():
        acc_ref[...] = acc_ref[...] + y

    @pl.when(h == num_heads - 1)
    def _finalize():
        out_ref[0] = (acc_ref[...] + bo_ref[...]).astype(out_ref.dtype)


def _default_vmem_limit_bytes():
    # ~75% of physical VMEM: ~96 MiB on v5e/v6e (128 MiB), ~48 MiB on v7x (64 MiB).
    try:
        return int(pltpu.get_tpu_info().vmem_capacity_bytes) * 3 // 4
    except Exception:  # pragma: no cover - conservative fallback
        return 48 * 1024 * 1024


def multi_head_self_attention(x, params, *, num_heads, auto_regressive_mask,
                              q_tile=256, compute_dtype=jnp.float32,
                              attn_dtype=jnp.float32, approx_reciprocal=True,
                              vmem_limit_bytes=None):
    """x: (B, S, D). Returns (output (B, S, D), attention (B, H, S, S))."""
    B, S, D = x.shape
    H = num_heads
    assert D % H == 0, "dim_embeddings must be divisible by num_heads"
    dk = D // H

    # Query-tile size (use 128-256 on v7x, 256-512 on v5e/v6e for long S).
    tq = min(q_tile, S)
    if S % tq != 0:
        tq = S  # TODO(synk): ragged query tiling not implemented
    num_q_tiles = S // tq

    # --- one-time, head-major weight layout plumbing (outside the kernel) ---
    scale = 1.0 / math.sqrt(dk)
    wq_hm = (params["wq"].T * scale).reshape(D, H, dk).transpose(1, 0, 2)   # (H, D, dk)
    bq_hm = (params["bq"] * scale).reshape(H, 1, dk)                        # (H, 1, dk)
    wkv_t = params["wkv"].T                                                 # (D, 2D)
    wk_hm = wkv_t[:, :D].reshape(D, H, dk)
    wv_hm = wkv_t[:, D:].reshape(D, H, dk)
    wkv_hm = jnp.concatenate([wk_hm, wv_hm], axis=-1).transpose(1, 0, 2)    # (H, D, 2dk)
    bk_hm = params["bkv"][:D].reshape(H, dk)
    bv_hm = params["bkv"][D:].reshape(H, dk)
    bkv_hm = jnp.concatenate([bk_hm, bv_hm], axis=-1).reshape(H, 1, 2 * dk) # (H, 1, 2dk)
    wo_hm = params["wo"].T.reshape(H, dk, D)                                # (H, dk, D)
    bo = params["bo"].reshape(1, D)                                         # (1, D)

    if vmem_limit_bytes is None:
        vmem_limit_bytes = _default_vmem_limit_bytes()

    kernel = functools.partial(
        _mhsa_kernel,
        causal=auto_regressive_mask,
        compute_dtype=compute_dtype,
        tq=tq,
        approx_reciprocal=approx_reciprocal)

    out, attn = pl.pallas_call(
        kernel,
        out_shape=(
            jax.ShapeDtypeStruct((B, S, D), x.dtype),
            jax.ShapeDtypeStruct((B, H, S, S), attn_dtype),
        ),
        grid_spec=pltpu.PrefetchScalarGridSpec(
            num_scalar_prefetch=0,
            grid=(B, num_q_tiles, H),                 # head is the inner loop
            in_specs=[
                pl.BlockSpec((1, tq, D), lambda b, qi, h: (b, qi, 0)),      # x (q tile)
                pl.BlockSpec((1, S, D), lambda b, qi, h: (b, 0, 0)),        # x (full, K/V)
                pl.BlockSpec((H, D, dk), lambda b, qi, h: (0, 0, 0)),       # Wq (resident)
                pl.BlockSpec((H, 1, dk), lambda b, qi, h: (0, 0, 0)),       # bq (resident)
                pl.BlockSpec((H, D, 2 * dk), lambda b, qi, h: (0, 0, 0)),   # Wkv (resident)
                pl.BlockSpec((H, 1, 2 * dk), lambda b, qi, h: (0, 0, 0)),   # bkv (resident)
                pl.BlockSpec((H, dk, D), lambda b, qi, h: (0, 0, 0)),       # Wo (resident)
                pl.BlockSpec((1, D), lambda b, qi, h: (0, 0)),              # bo (resident)
            ],
            out_specs=[
                pl.BlockSpec((1, tq, D), lambda b, qi, h: (b, qi, 0)),      # resident over h
                pl.BlockSpec((1, 1, tq, S), lambda b, qi, h: (b, h, qi, 0)),
            ],
            scratch_shapes=[pltpu.VMEM((tq, D), jnp.float32)],              # f32 head accum
        ),
        compiler_params=pltpu.CompilerParams(
            dimension_semantics=("parallel", "parallel", "arbitrary"),
            vmem_limit_bytes=vmem_limit_bytes),
    )(x, x, wq_hm, bq_hm, wkv_hm, bkv_hm, wo_hm, bo)
    return out, attn


def reference_mhsa(x, params, *, num_heads, auto_regressive_mask):
    B, S, D = x.shape
    H = num_heads
    dk = D // H
    q = x @ params["wq"].T + params["bq"]
    kv = x @ params["wkv"].T + params["bkv"]
    k, v = kv[..., :D], kv[..., D:]

    def split(t):
        return jnp.transpose(t.reshape(B, S, H, dk), (0, 2, 1, 3))

    qh, kh, vh = split(q), split(k), split(v)
    scores = jnp.einsum("bhqd,bhkd->bhqk", qh, kh) / math.sqrt(dk)
    if auto_regressive_mask:
        mask = jnp.tril(jnp.ones((S, S), dtype=bool))
        scores = jnp.where(mask[None, None], scores, -jnp.inf)
    w = jax.nn.softmax(scores, axis=-1)
    o = jnp.einsum("bhqk,bhkd->bhqd", w, vh)
    o = jnp.transpose(o, (0, 2, 1, 3)).reshape(B, S, D)
    return o @ params["wo"].T + params["bo"], w


if __name__ == "__main__":
    # TODO(synk): the use_cache=True incremental-decode path (kv_cache) is not
    # implemented; only the standard forward pass is covered.
    B, S, D, H = 2, 8, 32, 4
    key = jax.random.PRNGKey(0)
    ks = jax.random.split(key, 7)

    def init(k, shape, fan_in):
        bound = 1.0 / math.sqrt(fan_in)
        return jax.random.uniform(k, shape, jnp.float32, -bound, bound)

    params = {
        "wq": init(ks[0], (D, D), D),
        "bq": init(ks[1], (D,), D),
        "wkv": init(ks[2], (2 * D, D), D),
        "bkv": init(ks[3], (2 * D,), D),
        "wo": init(ks[4], (D, D), D),
        "bo": init(ks[5], (D,), D),
    }
    x = jax.random.normal(ks[6], (B, S, D), jnp.float32)

    ref_out, ref_attn = reference_mhsa(
        x, params, num_heads=H, auto_regressive_mask=True)

    # Strict-tolerance check: exact reciprocal, f32 attention-weights output.
    out, attn = multi_head_self_attention(
        x, params, num_heads=H, auto_regressive_mask=True,
        approx_reciprocal=False, attn_dtype=jnp.float32)
    out, attn = jax.block_until_ready((out, attn))
    assert jnp.allclose(out, ref_out, atol=1e-4, rtol=1e-4)
    assert jnp.allclose(attn, ref_attn, atol=1e-4, rtol=1e-4)

    # Production path: EUP approximate reciprocal + bf16 attention writeback
    # (halves the dominant (B,H,S,S) HBM write); looser tolerance.
    out2, attn2 = multi_head_self_attention(
        x, params, num_heads=H, auto_regressive_mask=True,
        approx_reciprocal=True, attn_dtype=jnp.bfloat16)
    out2, attn2 = jax.block_until_ready((out2, attn2))
    assert jnp.allclose(out2, ref_out, atol=3e-2, rtol=3e-2)
    assert jnp.allclose(attn2.astype(jnp.float32), ref_attn, atol=3e-2, rtol=3e-2)

    print("KERNEL_OK")
</pallas_src>

<mosaic_0001>
module attributes {stable_mosaic.version = 11 : i64} {
  func.func @_mhsa_kernel(%arg0: i32, %arg1: i32, %arg2: i32, %arg3: memref<1x8x32xf32, #tpu.memory_space<vmem>>, %arg4: memref<1x8x32xf32, #tpu.memory_space<vmem>>, %arg5: memref<4x32x8xf32, #tpu.memory_space<vmem>>, %arg6: memref<4x1x8xf32, #tpu.memory_space<vmem>>, %arg7: memref<4x32x16xf32, #tpu.memory_space<vmem>>, %arg8: memref<4x1x16xf32, #tpu.memory_space<vmem>>, %arg9: memref<4x8x32xf32, #tpu.memory_space<vmem>>, %arg10: memref<1x32xf32, #tpu.memory_space<vmem>>, %arg11: memref<1x8x32xf32, #tpu.memory_space<vmem>>, %arg12: memref<1x1x8x8xf32, #tpu.memory_space<vmem>>, %arg13: memref<8x32xf32, #tpu.memory_space<vmem>>) attributes {dimension_semantics = [#tpu.dimension_semantics<parallel>, #tpu.dimension_semantics<parallel>, #tpu.dimension_semantics<arbitrary>], iteration_bounds = array<i64: 2, 1, 4>, scalar_prefetch = 0 : i64, scratch_operands = 1 : i64, tpu.core_type = #tpu.core_type<tc>, window_params = [{transform_indices = @transform_0, window_bounds = array<i64: 1, 8, 32>}, {transform_indices = @transform_1, window_bounds = array<i64: 1, 8, 32>}, {pipeline_mode = #tpu.pipeline_mode<synchronous>, transform_indices = @transform_2, window_bounds = array<i64: 4, 32, 8>}, {pipeline_mode = #tpu.pipeline_mode<synchronous>, transform_indices = @transform_3, window_bounds = array<i64: 4, 1, 8>}, {pipeline_mode = #tpu.pipeline_mode<synchronous>, transform_indices = @transform_4, window_bounds = array<i64: 4, 32, 16>}, {pipeline_mode = #tpu.pipeline_mode<synchronous>, transform_indices = @transform_5, window_bounds = array<i64: 4, 1, 16>}, {pipeline_mode = #tpu.pipeline_mode<synchronous>, transform_indices = @transform_6, window_bounds = array<i64: 4, 8, 32>}, {pipeline_mode = #tpu.pipeline_mode<synchronous>, transform_indices = @transform_7, window_bounds = array<i64: 1, 32>}, {transform_indices = @transform_8, window_bounds = array<i64: 1, 8, 32>}, {transform_indices = @transform_9, window_bounds = array<i64: 1, 1, 8, 8>}]} {
    %c0 = arith.constant 0 : index
    %c0_0 = arith.constant 0 : index
    %c0_1 = arith.constant 0 : index
    %0 = vector.load %arg3[%c0, %c0_0, %c0_1] : memref<1x8x32xf32, #tpu.memory_space<vmem>>, vector<1x8x32xf32>
    %1 = vector.shape_cast %0 : vector<1x8x32xf32> to vector<8x32xf32>
    %c0_2 = arith.constant 0 : index
    %c0_3 = arith.constant 0 : index
    %c0_4 = arith.constant 0 : index
    %2 = vector.load %arg4[%c0_2, %c0_3, %c0_4] : memref<1x8x32xf32, #tpu.memory_space<vmem>>, vector<1x8x32xf32>
    %3 = vector.shape_cast %2 : vector<1x8x32xf32> to vector<8x32xf32>
    %4 = arith.index_cast %arg2 : i32 to index
    %c0_5 = arith.constant 0 : index
    %c0_6 = arith.constant 0 : index
    %5 = vector.load %arg5[%4, %c0_5, %c0_6] : memref<4x32x8xf32, #tpu.memory_space<vmem>>, vector<1x32x8xf32>
    %6 = vector.shape_cast %5 : vector<1x32x8xf32> to vector<32x8xf32>
    %cst = arith.constant dense<0.000000e+00> : vector<8x8xf32>
    %7 = tpu.matmul %1, %6, %cst {dimension_numbers = #tpu.dot_dimension_numbers<[1], [0], [0], [1], [0, 0, 1, 1], [], []>} : vector<8x32xf32>, vector<32x8xf32>, vector<8x8xf32> -> vector<8x8xf32>
    %8 = arith.index_cast %arg2 : i32 to index
    %c0_7 = arith.constant 0 : index
    %c0_8 = arith.constant 0 : index
    %9 = vector.load %arg6[%8, %c0_7, %c0_8] : memref<4x1x8xf32, #tpu.memory_space<vmem>>, vector<1x1x8xf32>
    %10 = vector.shape_cast %9 : vector<1x1x8xf32> to vector<1x8xf32>
    %11 = vector.broadcast %10 : vector<1x8xf32> to vector<8x8xf32>
    %12 = arith.addf %7, %11 : vector<8x8xf32>
    %13 = arith.index_cast %arg2 : i32 to index
    %c0_9 = arith.constant 0 : index
    %c0_10 = arith.constant 0 : index
    %14 = vector.load %arg7[%13, %c0_9, %c0_10] : memref<4x32x16xf32, #tpu.memory_space<vmem>>, vector<1x32x16xf32>
    %15 = vector.shape_cast %14 : vector<1x32x16xf32> to vector<32x16xf32>
    %cst_11 = arith.constant dense<0.000000e+00> : vector<8x16xf32>
    %16 = tpu.matmul %3, %15, %cst_11 {dimension_numbers = #tpu.dot_dimension_numbers<[1], [0], [0], [1], [0, 0, 1, 1], [], []>} : vector<8x32xf32>, vector<32x16xf32>, vector<8x16xf32> -> vector<8x16xf32>
    %17 = arith.index_cast %arg2 : i32 to index
    %c0_12 = arith.constant 0 : index
    %c0_13 = arith.constant 0 : index
    %18 = vector.load %arg8[%17, %c0_12, %c0_13] : memref<4x1x16xf32, #tpu.memory_space<vmem>>, vector<1x1x16xf32>
    %19 = vector.shape_cast %18 : vector<1x1x16xf32> to vector<1x16xf32>
    %20 = vector.broadcast %19 : vector<1x16xf32> to vector<8x16xf32>
    %21 = arith.addf %16, %20 : vector<8x16xf32>
    %22 = vector.extract_strided_slice %21 {offsets = [0, 0], sizes = [8, 8], strides = [1, 1]} : vector<8x16xf32> to vector<8x8xf32>
    %23 = vector.extract_strided_slice %21 {offsets = [0, 8], sizes = [8, 8], strides = [1, 1]} : vector<8x16xf32> to vector<8x8xf32>
    %cst_14 = arith.constant dense<0.000000e+00> : vector<8x8xf32>
    %24 = tpu.matmul %12, %22, %cst_14 {dimension_numbers = #tpu.dot_dimension_numbers<[1], [1], [0], [0], [0, 0, 1, 0], [], []>} : vector<8x8xf32>, vector<8x8xf32>, vector<8x8xf32> -> vector<8x8xf32>
    %25 = tpu.iota {dimensions = array<i32: 0>} : vector<8x8xi32>
    %c8_i32 = arith.constant 8 : i32
    %26 = arith.muli %arg1, %c8_i32 : i32
    %27 = vector.broadcast %26 : i32 to vector<8x8xi32>
    %28 = arith.addi %25, %27 : vector<8x8xi32>
    %29 = tpu.iota {dimensions = array<i32: 1>} : vector<8x8xi32>
    %30 = arith.cmpi sle, %29, %28 : vector<8x8xi32>
    %cst_15 = arith.constant -1.000000e+30 : f32
    %31 = vector.broadcast %cst_15 : f32 to vector<8x8xf32>
    %32 = arith.select %30, %24, %31 : vector<8x8xi1>, vector<8x8xf32>
    %cst_16 = arith.constant dense<0xFF800000> : vector<8xf32>
    %33 = vector.multi_reduction <maximumf>, %32, %cst_16 [1] : vector<8x8xf32> to vector<8xf32>
    %34 = vector.shape_cast %33 : vector<8xf32> to vector<8x1xf32>
    %35 = vector.broadcast %34 : vector<8x1xf32> to vector<8x8xf32>
    %36 = arith.subf %32, %35 : vector<8x8xf32>
    %37 = math.exp %36 : vector<8x8xf32>
    %cst_17 = arith.constant dense<0.000000e+00> : vector<8xf32>
    %38 = vector.multi_reduction <add>, %37, %cst_17 [1] : vector<8x8xf32> to vector<8xf32>
    %39 = vector.shape_cast %38 : vector<8xf32> to vector<8x1xf32>
    %40 = tpu.reciprocal %39 : vector<8x1xf32> -> vector<8x1xf32>
    %41 = vector.broadcast %40 : vector<8x1xf32> to vector<8x8xf32>
    %42 = arith.mulf %37, %41 : vector<8x8xf32>
    %c0_18 = arith.constant 0 : index
    %c0_19 = arith.constant 0 : index
    %c0_20 = arith.constant 0 : index
    %c0_21 = arith.constant 0 : index
    %43 = vector.load %arg12[%c0_18, %c0_19, %c0_20, %c0_21] : memref<1x1x8x8xf32, #tpu.memory_space<vmem>>, vector<1x1x8x8xf32>
    %44 = vector.shape_cast %43 : vector<1x1x8x8xf32> to vector<8x8xf32>
    %45 = vector.shape_cast %42 : vector<8x8xf32> to vector<1x1x8x8xf32>
    tpu.vector_store %arg12[%c0_18, %c0_19, %c0_20, %c0_21], %45 {strides = array<i32>} : memref<1x1x8x8xf32, #tpu.memory_space<vmem>>, vector<1x1x8x8xf32>,
    %cst_22 = arith.constant dense<0.000000e+00> : vector<8x8xf32>
    %46 = tpu.matmul %42, %23, %cst_22 {dimension_numbers = #tpu.dot_dimension_numbers<[1], [0], [0], [1], [0, 0, 1, 1], [], []>} : vector<8x8xf32>, vector<8x8xf32>, vector<8x8xf32> -> vector<8x8xf32>
    %47 = arith.index_cast %arg2 : i32 to index
    %c0_23 = arith.constant 0 : index
    %c0_24 = arith.constant 0 : index
    %48 = vector.load %arg9[%47, %c0_23, %c0_24] : memref<4x8x32xf32, #tpu.memory_space<vmem>>, vector<1x8x32xf32>
    %49 = vector.shape_cast %48 : vector<1x8x32xf32> to vector<8x32xf32>
    %cst_25 = arith.constant dense<0.000000e+00> : vector<8x32xf32>
    %50 = tpu.matmul %46, %49, %cst_25 {dimension_numbers = #tpu.dot_dimension_numbers<[1], [0], [0], [1], [0, 0, 1, 1], [], []>} : vector<8x8xf32>, vector<8x32xf32>, vector<8x32xf32> -> vector<8x32xf32>
    %c0_i32 = arith.constant 0 : i32
    %51 = arith.cmpi eq, %arg2, %c0_i32 : i32
    %52 = arith.extui %51 : i1 to i32
    %c0_i32_26 = arith.constant 0 : i32
    %53 = arith.cmpi ne, %52, %c0_i32_26 : i32
    scf.if %53 {
      %c0_30 = arith.constant 0 : index
      %c0_31 = arith.constant 0 : index
      %60 = vector.load %arg13[%c0_30, %c0_31] : memref<8x32xf32, #tpu.memory_space<vmem>>, vector<8x32xf32>
      tpu.vector_store %arg13[%c0_30, %c0_31], %50 {strides = array<i32>} : memref<8x32xf32, #tpu.memory_space<vmem>>, vector<8x32xf32>,
    } else {
    }
    %c0_i32_27 = arith.constant 0 : i32
    %54 = arith.cmpi ne, %arg2, %c0_i32_27 : i32
    %55 = arith.extui %54 : i1 to i32
    %c0_i32_28 = arith.constant 0 : i32
    %56 = arith.cmpi ne, %55, %c0_i32_28 : i32
    scf.if %56 {
      %c0_30 = arith.constant 0 : index
      %c0_31 = arith.constant 0 : index
      %60 = vector.load %arg13[%c0_30, %c0_31] : memref<8x32xf32, #tpu.memory_space<vmem>>, vector<8x32xf32>
      %61 = arith.addf %60, %50 : vector<8x32xf32>
      %c0_32 = arith.constant 0 : index
      %c0_33 = arith.constant 0 : index
      %62 = vector.load %arg13[%c0_32, %c0_33] : memref<8x32xf32, #tpu.memory_space<vmem>>, vector<8x32xf32>
      tpu.vector_store %arg13[%c0_32, %c0_33], %61 {strides = array<i32>} : memref<8x32xf32, #tpu.memory_space<vmem>>, vector<8x32xf32>,
    } else {
    }
    %c3_i32 = arith.constant 3 : i32
    %57 = arith.cmpi eq, %arg2, %c3_i32 : i32
    %58 = arith.extui %57 : i1 to i32
    %c0_i32_29 = arith.constant 0 : i32
    %59 = arith.cmpi ne, %58, %c0_i32_29 : i32
    scf.if %59 {
      %c0_30 = arith.constant 0 : index
      %c0_31 = arith.constant 0 : index
      %60 = vector.load %arg13[%c0_30, %c0_31] : memref<8x32xf32, #tpu.memory_space<vmem>>, vector<8x32xf32>
      %c0_32 = arith.constant 0 : index
      %c0_33 = arith.constant 0 : index
      %61 = vector.load %arg10[%c0_32, %c0_33] : memref<1x32xf32, #tpu.memory_space<vmem>>, vector<1x32xf32>
      %62 = vector.broadcast %61 : vector<1x32xf32> to vector<8x32xf32>
      %63 = arith.addf %60, %62 : vector<8x32xf32>
      %c0_34 = arith.constant 0 : index
      %c0_35 = arith.constant 0 : index
      %c0_36 = arith.constant 0 : index
      %64 = vector.load %arg11[%c0_34, %c0_35, %c0_36] : memref<1x8x32xf32, #tpu.memory_space<vmem>>, vector<1x8x32xf32>
      %65 = vector.shape_cast %64 : vector<1x8x32xf32> to vector<8x32xf32>
      %66 = vector.shape_cast %63 : vector<8x32xf32> to vector<1x8x32xf32>
      tpu.vector_store %arg11[%c0_34, %c0_35, %c0_36], %66 {strides = array<i32>} : memref<1x8x32xf32, #tpu.memory_space<vmem>>, vector<1x8x32xf32>,
    } else {
    }
    return
  }
  func.func @transform_0(%arg0: i32, %arg1: i32, %arg2: i32) -> (i32, i32, i32) {
    %c0_i32 = arith.constant 0 : i32
    %c0_i32_0 = arith.constant 0 : i32
    return %arg0, %arg1, %c0_i32 : i32, i32, i32
  }
  func.func @transform_1(%arg0: i32, %arg1: i32, %arg2: i32) -> (i32, i32, i32) {
    %c0_i32 = arith.constant 0 : i32
    %c0_i32_0 = arith.constant 0 : i32
    %c0_i32_1 = arith.constant 0 : i32
    return %arg0, %c0_i32, %c0_i32_0 : i32, i32, i32
  }
  func.func @transform_2(%arg0: i32, %arg1: i32, %arg2: i32) -> (i32, i32, i32) {
    %c0_i32 = arith.constant 0 : i32
    %c0_i32_0 = arith.constant 0 : i32
    %c0_i32_1 = arith.constant 0 : i32
    %c0_i32_2 = arith.constant 0 : i32
    return %c0_i32, %c0_i32_0, %c0_i32_1 : i32, i32, i32
  }
  func.func @transform_3(%arg0: i32, %arg1: i32, %arg2: i32) -> (i32, i32, i32) {
    %c0_i32 = arith.constant 0 : i32
    %c0_i32_0 = arith.constant 0 : i32
    %c0_i32_1 = arith.constant 0 : i32
    %c0_i32_2 = arith.constant 0 : i32
    return %c0_i32, %c0_i32_0, %c0_i32_1 : i32, i32, i32
  }
  func.func @transform_4(%arg0: i32, %arg1: i32, %arg2: i32) -> (i32, i32, i32) {
    %c0_i32 = arith.constant 0 : i32
    %c0_i32_0 = arith.constant 0 : i32
    %c0_i32_1 = arith.constant 0 : i32
    %c0_i32_2 = arith.constant 0 : i32
    return %c0_i32, %c0_i32_0, %c0_i32_1 : i32, i32, i32
  }
  func.func @transform_5(%arg0: i32, %arg1: i32, %arg2: i32) -> (i32, i32, i32) {
    %c0_i32 = arith.constant 0 : i32
    %c0_i32_0 = arith.constant 0 : i32
    %c0_i32_1 = arith.constant 0 : i32
    %c0_i32_2 = arith.constant 0 : i32
    return %c0_i32, %c0_i32_0, %c0_i32_1 : i32, i32, i32
  }
  func.func @transform_6(%arg0: i32, %arg1: i32, %arg2: i32) -> (i32, i32, i32) {
    %c0_i32 = arith.constant 0 : i32
    %c0_i32_0 = arith.constant 0 : i32
    %c0_i32_1 = arith.constant 0 : i32
    %c0_i32_2 = arith.constant 0 : i32
    return %c0_i32, %c0_i32_0, %c0_i32_1 : i32, i32, i32
  }
  func.func @transform_7(%arg0: i32, %arg1: i32, %arg2: i32) -> (i32, i32) {
    %c0_i32 = arith.constant 0 : i32
    %c0_i32_0 = arith.constant 0 : i32
    %c0_i32_1 = arith.constant 0 : i32
    return %c0_i32, %c0_i32_0 : i32, i32
  }
  func.func @transform_8(%arg0: i32, %arg1: i32, %arg2: i32) -> (i32, i32, i32) {
    %c0_i32 = arith.constant 0 : i32
    %c0_i32_0 = arith.constant 0 : i32
    return %arg0, %arg1, %c0_i32 : i32, i32, i32
  }
  func.func @transform_9(%arg0: i32, %arg1: i32, %arg2: i32) -> (i32, i32, i32, i32) {
    %c0_i32 = arith.constant 0 : i32
    %c0_i32_0 = arith.constant 0 : i32
    return %arg0, %arg2, %arg1, %c0_i32 : i32, i32, i32, i32
  }
}

</mosaic_0001>

<bundles_post_ra>
// kernel: tpu_custom_call.1
= control target key start
LH: loop header
LB: loop body
LE: loop exit
PB: predicated region body
PF: predicated region fallthrough
CT: control target
= control target key end

     0   :  { %s1666_s0 = inlined_call_operand.vmem [shape: f32[2,8,32], index: 0, kind: input, shape index: {}]   ;;  %s1667_s1 = inlined_call_operand.vmem [shape: f32[2,8,32], index: 1, kind: input, shape index: {}]   ;;  %s1668_s2 = inlined_call_operand.vmem [shape: f32[4,32,8], index: 2, kind: input, shape index: {}]   ;;  %s1669_s3 = inlined_call_operand.vmem [shape: f32[4,1,8], index: 3, kind: input, shape index: {}]   ;;  %s1670_s4 = inlined_call_operand.vmem [shape: f32[4,32,16], index: 4, kind: input, shape index: {}]   ;;  %s1671_s5 = inlined_call_operand.vmem [shape: f32[4,1,16], index: 5, kind: input, shape index: {}]   ;;  %s1672_s6 = inlined_call_operand.vmem [shape: f32[4,8,32], index: 6, kind: input, shape index: {}]   ;;  %s1673_s7 = inlined_call_operand.vmem [shape: f32[1,32], index: 7, kind: input, shape index: {}]   ;;  %s1674_s8 = inlined_call_operand.hbm [shape: f32[2,8,32], index: 8, kind: output, shape index: {0}]   ;;  %s1675_s9 = inlined_call_operand.hbm [shape: f32[2,4,8,8], index: 9, kind: output, shape index: {1}]  }
   0x1   :  { %1687 = sst [smem:[#allocation15_spill]] %s1666_s0 }
   0x2   :  { %1688 = sst [smem:[#allocation16_spill]] %s1667_s1 }
   0x3   :  { %1689 = sst [smem:[#allocation17_spill]] %s1668_s2 }
   0x4   :  { %1690 = sst [smem:[#allocation18_spill]] %s1669_s3 }
   0x5   :  { %1691 = sst [smem:[#allocation19_spill]] %s1670_s4 }
   0x6   :  { %1692 = sst [smem:[#allocation20_spill]] %s1671_s5 }
   0x7   :  { %1693 = sst [smem:[#allocation21_spill]] %s1672_s6 }
   0x8   :  { %1694 = sst [smem:[#allocation22_spill]] %s1673_s7 }
   0x9   :  { %1695 = sst [smem:[#allocation23_spill]] %s1674_s8 }
   0xa   :  { %1696 = sst [smem:[#allocation24_spill]] %s1675_s9 }
   0xb   :  { %15 = vsyncpa [#allocation4], 0 }
   0xc   :  { %17 = vsyncpa [#allocation4 + $0x1], 0 }
   0xd   :  { %18 = vsyncpa [#allocation6], 0 }
   0xe   :  { %20 = vsyncpa [#allocation6 + $0x1], 0  ;;  %s1405_s30 = smov 0   ;;  %s1407_s10 = smov 0  }
   0xf   :  { %s1409_s11 = smov 0   ;;  %s1411_s12 = smov 0  }
  0x10   :  { %s1413_s13 = smov 0   ;;  %s1415_s14 = smov 0  }
  0x11   :  { %s1417_s15 = smov 0   ;;  %s1419_s16 = smov 0  }
  0x12   :  { %s1421_s17 = smov 0   ;;  %s1423_s18 = smov 0  }
  0x13   :  { %s1425_s19 = smov 0  }
  0x14 LB: > { %1697 = sst [smem:[#allocation9_spill]] %s1320_s12  ;;  %s1012_s20 = sadd.s32 4294967295, %s1348_s19   ;;  %s1348_s19 = sphi %s1425_s19, %s26_s19   ;;  %s1344_s18 = sphi %s1423_s18, %s1730_s18   ;;  %s1340_s17 = sphi %s1421_s17, %s1737_s17   ;;  %s1336_s16 = sphi %s1419_s16, %s1728_s16   ;;  %s1332_s15 = sphi %s1417_s15, %s1727_s15   ;;  %s1328_s14 = sphi %s1415_s14, %s1736_s14   ;;  %s1324_s13 = sphi %s1413_s13, %s1735_s13   ;;  %s1320_s12 = sphi %s1411_s12, %s1734_s12   ;;  %s1316_s11 = sphi %s1409_s11, %s1733_s11   ;;  %s1312_s10 = sphi %s1407_s10, %s1732_s10   ;;  %s1308_s30 = sphi %s1405_s30, %s1731_s30  }
  0x15   : > { %1698 = sst [smem:[#allocation10_spill]] %s1340_s17  ;;  %s1013_s21 = sadd.s32 4294967294, %s1348_s19  }
  0x16   : > { %1699 = sst [smem:[#allocation11_spill]] %s1344_s18  ;;  %s38_s22 = sadd.s32 1, %s1340_s17 }
  0x17   : > { %s45_s23 = sadd.s32 1, %s1344_s18  ;;  %p39_p0 = scmp.ge.s32.totalorder %s38_s22, 4 }
  0x18   : > { %s234_s24 = sadd.s32 1, %s1328_s14  ;;  %p244_p1 = scmp.ne.s32.totalorder %s1328_s14, %s1324_s13 }
  0x19   : > { %p1467_p2 = scmp.eq.s32.totalorder %s1012_s20, 7  ;;  %s1739_s22 = smov (%p39_p0, %s38_s22), 0 }
  0x1a   : > { %1701 = sst [smem:[#allocation12_spill]] %s1739_s22  ;;  %s1741_s23 = smov (!%p39_p0, %s45_s23), %s1344_s18 }
  0x1b   : > { %p1476_p3 = por %p1467_p2, %p244_p1  ;;  %p250_p4 = scmp.ne.s32.totalorder %s1324_s13, %s1320_s12 }
  0x1c   : > { %p47_p5 = scmp.ge.s32.totalorder %s1741_s23, 2  ;;  %p1482_p6 = scmp.eq.s32.totalorder %s1013_s21, 7 }
  0x1d   : > { %s258_s28 = ssub.s32 %s1340_s17, %s1739_s22  ;;  %s264_s29 = sadd.s32 1, %s1316_s11 }
  0x1e   : > { %s1743_s23 = smov (%p47_p5, %s1741_s23), 0  ;;  %p1493_p7 = por %p1482_p6, %p250_p4 }
  0x1f   : > { %1704 = sst [smem:[#allocation13_spill]] %s1743_s23  ;;  %p274_p8 = scmp.ne.s32.totalorder %s1316_s11, %s1312_s10 }
  0x20   : > { %s1705_s20 = scalar_select %p1493_p7, 1, 0 }
  0x21   : > { %s229_s12 = ssub.s32 %s1344_s18, %s1743_s23  ;;  %p280_p9 = scmp.ne.s32.totalorder %s1312_s10, %s1308_s30 }
  0x22   : > { %p232_p10 = scmp.eq.s32.totalorder %s229_s12, 0  ;;  %s259_s21 = sor.u32 %s258_s28, %s229_s12 }
  0x23   : > { %p262_p11 = scmp.eq.s32.totalorder %s259_s21, 0  ;;  %p1505_p12 = por %p274_p8, %p1467_p2 }
  0x24   : > { %s1510_s22 = scalar_select %p232_p10, %s1328_s14, %s234_s24  }
  0x25   : > { %s1513_s17 = scalar_select %p262_p11, %s1316_s11, %s264_s29  }
  0x26   : > { %1707 = sst [smem:[#allocation14_spill]] %s1510_s22  ;;  %p1517_p13 = por %p280_p9, %p1482_p6 }
  0x27   : > { %p1016_p0 = scmp.ge.s32.totalorder %s1348_s19, 1  ;;  %p334_p1 = scmp.lt.s32.totalorder %s1348_s19, 9 }
  0x28   : > { %s1708_s8 = scalar_select %p1517_p13, 1, 0 }
  0x29   : > { %p335_p4 = pnand %p1016_p0, %p334_p1 }
  0x2a   : > { %s1021_s12 = sshll.u32 (!%p335_p4), %s1332_s15, 5  ;;  %s1683_s25 = sand.u32 (!%p335_p4), 1, %s1324_s13  }
  0x2b   : > { %338 = sbr.rel (%p335_p4) target bundleno = 1226 (0x4ca), region = 52  ;;  %s1709_s4 = sld [smem:[#allocation19_spill]] (!%p335_p4) }
  0x2c   : > { %s1530_s29 = sshll.u32 (!%p335_p4), %s1683_s25, 3  ;;  %s1710_s2 = sld [smem:[#allocation17_spill]] (!%p335_p4) }
  0x2d   : > { %p381_p2 = scmp.lt.s32.totalorder (!%p335_p4), %s1336_s16, 1  ;;  %s1711_s1 = sld [smem:[#allocation16_spill]] (!%p335_p4) }
  0x2e   : > { %s1712_s0 = sld [smem:[#allocation15_spill]] (!%p335_p4)  ;;  %p1031_p5 = scmp.ne.s32.totalorder (!%p335_p4), %s1332_s15, 0 }
  0x2f   : > { %s1713_s5 = sld [smem:[#allocation20_spill]] (!%p335_p4) }
  0x30   : > { %v1350_v0 = vmov 0.0   ;;  %vm1351_vm0 = vmmov 0   ;;  %s382_s24 = scalar_select %p381_p2, %s1336_s16, 1  ;;  %vm408_vm1 = vcmask 261120   ;;  %vm568_vm2 = vcmask 64512  }
  0x31   : > { %1069 = vmatprep.subr.mxu1 %v1350_v0  ;;  %s482_s27 = scalar_lea.vmem %s1709_s4, %s1021_s12  ;;  %1058 = vmatprep.subr.mxu0 %v1350_v0  ;;  %s1714_s3 = sld [smem:[#allocation18_spill]]  ;;  %v645_v20 = vlaneseq }
  0x32   : > { %v486_v1 = vld [vmem:[%s482_s27 + $0x18] sm:$0xff]  ;;  %s395_s18 = scalar_lea.vmem %s1710_s2, %s1021_s12  ;;  %v485_v2 = vld [vmem:[%s482_s27 + $0x10] sm:$0xff]  ;;  %1077 = vmatprep.mubr.msk.f32.mxu1 %vm1351_vm0, %v1350_v0  ;;  %1066 = vmatprep.mubr.msk.f32.mxu0 %vm1351_vm0, %v1350_v0  ;;  %v484_v5 = vld [vmem:[%s482_s27 + $0x8] sm:$0xff]  ;;  %s1019_s23 = sshll.u32 %s382_s24, 3 }
  0x33   : > { %1070 = vmatpush3.msra.mxu1 %v486_v1  ;;  %v399_v3 = vld [vmem:[%s395_s18 + $0x18] sm:$0xff]  ;;  %v398_v4 = vld [vmem:[%s395_s18 + $0x10] sm:$0xff]  ;;  %v397_v6 = vld [vmem:[%s395_s18 + $0x8] sm:$0xff]  ;;  %s391_s21 = scalar_lea.vmem %s1711_s1, %s1019_s23  ;;  %v646_v21 = vshrl.u32 %v645_v20, 7  ;;  %v651_v22 = vand.u32 127, %v645_v20  ;;  %s1029_s12 = sshll.u32 %s1332_s15, 3 }
  0x34   : > { %1071 = vmatprep.subr.mxu1 %v1350_v0  ;;  %1059 = vmatpush3.msra.mxu0 %v399_v3  ;;  %v483_v7 = vld [vmem:[%s482_s27] sm:$0xff]  ;;  %s387_s4 = scalar_lea.vmem %s1712_s0, %s1019_s23  ;;  %s1715_s6 = sld [smem:[#allocation21_spill]] }
  0x35   : > { %1072 = vmatpush3.msra.mxu1 %v485_v2  ;;  %1060 = vmatprep.subr.mxu0 %v1350_v0  ;;  %v396_v8 = vld [vmem:[%s395_s18] sm:$0xff]  ;;  %s487_s2 = scalar_lea.vmem %s1713_s5, %s1332_s15  ;;  %vm652_vm3 = vcmp.le.s32.totalorder %v651_v22, %v646_v21  ;;  %s1684_s27 = sand.u32 1, %s1312_s10  }
  0x36   : > { %1073 = vmatprep.subr.mxu1 %v1350_v0  ;;  %1061 = vmatpush3.msra.mxu0 %v398_v4  ;;  %v393_v9 = vld [vmem:[%s391_s21] sm:$0xff]  ;;  %s373_s24 = scalar_lea.vmem [#allocation3], %s1530_s29 }
  0x37   : > { %1074 = vmatpush3.msra.mxu1 %v484_v5  ;;  %1062 = vmatprep.subr.mxu0 %v1350_v0  ;;  %v392_v10 = vld [vmem:[%s387_s4] sm:$0xff]  ;;  %s400_s23 = scalar_lea.vmem %s1714_s3, %s1332_s15  ;;  %s1352_s4 = smov 120  }
  0x38   : > { %1075 = vmatprep.subr.mxu1 %v1350_v0  ;;  %1063 = vmatpush3.msra.mxu0 %v397_v6  ;;  %v1024_v11 = vld [vmem:[%s487_s2] ss:$0 sm:$0xff]  ;;  %s1569_s2 = sshll.u32 %s1684_s27, 3 }
  0x39   : > { %1076 = vmatpush3.msra.mxu1 %v483_v7  ;;  %1064 = vmatprep.subr.mxu0 %v1350_v0  ;;  %v1022_v12 = vld [vmem:[%s400_s23] ss:$0 sm:$0xff]  ;;  %s1685_s25 = scalar_lea.vmem [#allocation5], %s1569_s2 }
  0x3a   : > { %1078 = vmatmul.mubr.msk.f32.vlgmr.msra.gmra.mxu1 %vm408_vm1, %v393_v9  ;;  %1065 = vmatpush3.msra.mxu0 %v396_v8  ;;  %s743_s18 = scalar_lea.vmem %s1715_s6, %s1029_s12 }
  0x3b   : > { %1067 = vmatmul.mubr.msk.f32.vlgmr.msra.gmra.mxu0 %vm408_vm1, %v392_v10  ;;  %1080 = vmatprep.subr.mxu0 %v1350_v0  ;;  %v744_v32 = vld [vmem:[%s743_s18] sm:$0xff] }
  0x3c   : > { %1082 = vmatprep.mubr.msk.f32.mxu0 %vm1351_vm0, %v1350_v0  ;;  %1085 = vmatprep.subr.mxu1 %v1350_v0 }
  0x3d   : > { %1087 = vmatprep.mubr.msk.f32.mxu1 %vm1351_vm0, %v1350_v0 }
  0xfa   : > { %v564_v13 = vpop.f32.mrf.mxu1 }
  0xfb   : > { %v565_v14 = vadd.f32 %v1024_v11, %v564_v13  ;;  %v478_v15 = vpop.f32.mrf.mxu0 }
  0xfc   : > { %v479_v16 = vadd.f32 %v1022_v12, %v478_v15  ;;  %v1079_v17 = vpop.f32.mrf.mxu1 }
  0xfd   : > { %666 = vrot.lane.b32.xlu1 %v565_v14, %s1352_s4  ;;  %1081 = vmatpush3.xpose.msk.msra.mxu0 %vm568_vm2, %v565_v14  ;;  %v1068_v18 = vpop.f32.mrf.mxu0 }
  0xfe   : > { %1090 = vmatprep.subr.mxu0 %v1350_v0 }
 0x100   : > { %1083 = vmatmul.mubr.msk.f32.vlgmr.msra.gmra.mxu0 %vm568_vm2, %v479_v16 }
 0x101   : > { %1092 = vmatprep.mubr.msk.f32.mxu0 %vm1351_vm0, %v1350_v0  ;;  %1091 = vmatpush3.msra.mxu0 %v744_v32 }
 0x16f   : > { %v667_v19 = vpop.permute.xlu1 %666 }
 0x170   : > { %1086 = vmatpush3.msra.mxu1 %v667_v19 }
 0x1c0   : > { %v641_v23 = vpop.f32.mrf.mxu0 }
 0x1c1   : > { %v653_v24 = vsel %vm652_vm3, %v641_v23, -1e+30 }
 0x1c2   : > { %v1084_v25 = vpop.f32.mrf.mxu0  ;;  %v654_v26 = vsel %vm568_vm2, %v653_v24, -inf }
 0x1c3   : > { %655 = vmax.xlane.f32.xlu0 %v654_v26 }
 0x24c   : > { %v656_v27 = vpop.xlane.xlu0 %655 }
 0x24d   : > { %v657_v28 = vsub.f32 %v653_v24, %v656_v27 }
 0x24f   : > { %v658_v29 = vmul.f32 1.442695, %v657_v28 }
 0x251   : > { %1198 = vpow2.f32 %v658_v29 }
 0x25e   : > { %v1199_v30 = vpop.eup %1198 }
 0x25f   : > { %v660_v31 = vsel %vm568_vm2, %v1199_v30, 0.0 }
 0x260   : > { %661 = vadd.xlane.f32.xlu0 %v660_v31 }
 0x2e9   : > { %v662_v33 = vpop.xlane.xlu0 %661 }
 0x2ea   : > { %1200 = vrcp.f32 %v662_v33 }
 0x2f7   : > { %v1201_v34 = vpop.eup %1200 }
 0x2f8   : > { %v664_v35 = vmul.f32 %v1201_v34, %v1199_v30 }
 0x2fa   : > { %665 = vst.msk [vmem:[%s1685_s25] sm:$0xff] %vm568_vm2, %v664_v35  ;;  %1088 = vmatmul.mubr.msk.f32.vlgmr.msra.gmra.mxu1 %vm568_vm2, %v664_v35 }
 0x3ba   : > { %v738_v36 = vpop.f32.mrf.mxu1 }
 0x3bb   : > { %1093 = vmatmul.mubr.msk.f32.vlgmr.msra.gmra.mxu0 %vm568_vm2, %v738_v36 }
 0x3bc   : > { %v1089_v37 = vpop.f32.mrf.mxu1 }
 0x479   : > { %821 = sbr.rel (%p1031_p5) target bundleno = 1151 (0x47f), region = 56 }
 0x47b   : > { %v814_v38 = vpop.f32.mrf.mxu0 }
 0x47d   : > { %v1094_v39 = vpop.f32.mrf.mxu0 }
 0x47e   : > { %822 = vst.msk [vmem:[#allocation2] sm:$0xff] %vm408_vm1, %v814_v38 }
 0x47f PF: > { %p1032_p6 = scmp.eq.s32.totalorder %s1332_s15, 0 }
 0x481   : > { %826 = sbr.rel (%p1032_p6) target bundleno = 1162 (0x48a), region = 60 }
 0x486   : > { %v827_v40 = vld [vmem:[#allocation2] sm:$0xff] }
 0x487   : > { %v828_v41 = vadd.f32 %v827_v40, %v814_v38 }
 0x489   : > { %829 = vst.msk [vmem:[#allocation2] sm:$0xff] %vm408_vm1, %v828_v41 }
 0x48a PF: > { %p1033_p8 = scmp.ne.s32.totalorder %s1332_s15, 3 }
 0x48b   : > { %s1716_s7 = sld [smem:[#allocation22_spill]] (!%p1033_p8) }
 0x48c   : > { %833 = sbr.rel (%p1033_p8) target bundleno = 1174 (0x496), region = 64 }
 0x491   : > { %v834_v42 = vld [vmem:[#allocation2] sm:$0xff] }
 0x492   : > { %v1034_v43 = vld [vmem:[%s1716_s7] ss:$0 sm:$0xff] }
 0x493   : > { %v842_v44 = vadd.f32 %v1034_v43, %v834_v42 }
 0x495   : > { %843 = vst.msk [vmem:[%s373_s24] sm:$0xff] %vm408_vm1, %v842_v44 }
 0x496 PF: > { %s1037_s4 = sshll.u32 %s1336_s16, 7  ;;  %s1717_s21 = sld [smem:[#allocation23_spill]] }
 0x497   : > { %s864_s27 = sshll.u32 %s373_s24, 4  ;;  %s1718_s25 = sand.u32 1, %s1324_s13   ;;  %s865_s27 = int_to_ptr.vmem [resolvable:$true] %s864_s27 }
 0x498   : > { %s845_s0 = scalar_lea.sflag [#allocation4], %s1718_s25  ;;  %s1202_s1 = scalar_lea.vmem %s865_s27, 128 }
 0x499   : > { %p1203_p9 = scmp.ne.s32.totalorder %s865_s27, %s1202_s1  ;;  %s1353_s23 = smov [#allocation3]  }
 0x49a   : > { %s1206_s29 = sshll.u32 %s1353_s23, 4  ;;  %s1207_s29 = int_to_ptr.vmem [resolvable:$false] %s1206_s29 }
 0x49b   : > { %p1204_p10 = pnand %p1203_p9, %p1476_p3  ;;  %s1208_s3 = scalar_lea.vmem %s1207_s29, 256 }
 0x49c   : > { %s862_s18 = scalar_lea.hbm %s1717_s21, %s1037_s4  ;;  %p1209_p0 = scmp.lt.s32.totalorder %s865_s27, %s1207_s29 }
 0x49d   : > { %p1205_p11 = pneg %p1204_p10  ;;  %p1210_p1 = scmp.lt.s32.totalorder %s1208_s3, %s1202_s1 }
 0x49f   : > { %p1211_p4 = por %p1210_p1, %p1209_p0 }
 0x4a1   : > { %p1212_p2 = pnand %p1211_p4, %p1205_p11 }
 0x4a3   : > { %1215 = shalt.err (!%p1212_p2)
}
 0x4a4   : > { %s1216_s12 = scalar_lea.hbm %s862_s18, 128  ;;  %s1220_s4 = scalar_lea.hbm %s1717_s21, 256 }
 0x4a5   : > { %p1217_p5 = scmp.ne.s32.totalorder %s862_s18, %s1216_s12  ;;  %p1221_p9 = scmp.lt.s32.totalorder %s862_s18, %s1717_s21 }
 0x4a6   : > { %p1222_p10 = scmp.lt.s32.totalorder %s1220_s4, %s1216_s12 }
 0x4a7   : > { %p1218_p6 = pnand %p1217_p5, %p1476_p3 }
 0x4a8   : > { %p1223_p13 = por %p1222_p10, %p1221_p9 }
 0x4a9   : > { %p1219_p8 = pneg %p1218_p6 }
 0x4ab   : > { %p1224_p7 = pnand %p1223_p13, %p1219_p8 }
 0x4ad   : > { %1227 = shalt.err (!%p1224_p7)
}
 0x4ae   : > { %1095 = dma.vmem_to_hbm [thread:$0]  (%p1476_p3), %s865_s27, 128, %s862_s18, %s845_s0  }
 0x4af   : > { %s1038_s1 = sshll.u32 %s1336_s16, 2  ;;  %s1719_s3 = scalar_lea.vmem [#allocation5], %s1569_s2 }
 0x4b0   : > { %s880_s23 = sshll.u32 %s1719_s3, 4  ;;  %s876_s29 = sadd.s32 %s1332_s15, %s1038_s1  ;;  %s881_s23 = int_to_ptr.vmem [resolvable:$true] %s880_s23 }
 0x4b1   : > { %s1039_s25 = sshll.u32 %s876_s29, 7  ;;  %s1720_s12 = sld [smem:[#allocation24_spill]] }
 0x4b2   : > { %s1722_s6 = sand.u32 1, %s1312_s10   ;;  %s1228_s21 = scalar_lea.vmem %s881_s23, 128 }
 0x4b3   : > { %s850_s7 = scalar_lea.sflag [#allocation6], %s1722_s6  ;;  %p1229_p7 = scmp.ne.s32.totalorder %s881_s23, %s1228_s21 }
 0x4b4   : > { %s1354_s26 = smov [#allocation5]  }
 0x4b5   : > { %p1230_p13 = pnand %p1229_p7, %p1505_p12  ;;  %s1232_s22 = sshll.u32 %s1354_s26, 4  ;;  %s1233_s22 = int_to_ptr.vmem [resolvable:$false] %s1232_s22 }
 0x4b6   : > { %s1234_s0 = scalar_lea.vmem %s1233_s22, 256  ;;  %p1235_p3 = scmp.lt.s32.totalorder %s881_s23, %s1233_s22 }
 0x4b7   : > { %s1721_s4 = smov %s1720_s12  ;;  %s878_s28 = scalar_lea.hbm %s1720_s12, %s1039_s25 }
 0x4b8   : > { %p1231_p11 = pneg %p1230_p13  ;;  %p1236_p0 = scmp.lt.s32.totalorder %s1234_s0, %s1228_s21 }
 0x4ba   : > { %p1237_p1 = por %p1236_p0, %p1235_p3 }
 0x4bc   : > { %p1238_p4 = pnand %p1237_p1, %p1231_p11 }
 0x4be   : > { %1241 = shalt.err (!%p1238_p4)
}
 0x4bf   : > { %s1242_s15 = scalar_lea.hbm %s878_s28, 128  ;;  %s1246_s27 = scalar_lea.hbm %s1721_s4, 1024 }
 0x4c0   : > { %p1243_p2 = scmp.ne.s32.totalorder %s878_s28, %s1242_s15  ;;  %p1247_p8 = scmp.lt.s32.totalorder %s878_s28, %s1721_s4 }
 0x4c1   : > { %p1248_p9 = scmp.lt.s32.totalorder %s1246_s27, %s1242_s15 }
 0x4c2   : > { %p1244_p5 = pnand %p1243_p2, %p1505_p12 }
 0x4c3   : > { %p1249_p10 = por %p1248_p9, %p1247_p8 }
 0x4c4   : > { %p1245_p6 = pneg %p1244_p5 }
 0x4c6   : > { %p1250_p7 = pnand %p1249_p10, %p1245_p6 }
 0x4c8   : > { %1253 = shalt.err (!%p1250_p7)
}
 0x4c9   : > { %1096 = dma.vmem_to_hbm [thread:$0]  (%p1505_p12), %s881_s23, 128, %s878_s28, %s850_s7  }
 0x4ca PF: > { %s1723_s22 = sld [smem:[#allocation9_spill]]  ;;  %p1106_p13 = scmp.ge.s32.totalorder %s1348_s19, 2 }
 0x4cb   : > { %p1724_p11 = scmp.ne.s32.totalorder %s1705_s20, 0 }
 0x4cd   : > { %p1100_p3 = pnand %p1106_p13, %p1724_p11 }
 0x4cf   : > { %p1101_p0 = pneg %p1100_p3 }
 0x4d0   : > { %s892_s21 = sand.u32 1, %s1723_s22  }
 0x4d1   : > { %s893_s1 = scalar_lea.sflag [#allocation4], %s892_s21 }
 0x4d2   : > { %1299 = dma.done.wait (%p1101_p0), %s893_s1, 128  }
 0x4d3   : > { %1301 = vsyncadd (%p1101_p0), %s893_s1, 4294967168  ;;  %s901_s3 = sand.u32 1, %s1308_s30   ;;  %p1725_p1 = scmp.ne.s32.totalorder %s1708_s8, 0 }
 0x4d4   : > { %s902_s9 = scalar_lea.sflag [#allocation6], %s901_s3 }
 0x4d5   : > { %p1103_p4 = pnand %p1106_p13, %p1725_p1 }
 0x4d7   : > { %p1104_p2 = pneg %p1103_p4 }
 0x4d9   : > { %1303 = dma.done.wait (%p1104_p2), %s902_s9, 128  }
 0x4da   : > { %1305 = vsyncadd (%p1104_p2), %s902_s9, 4294967168  ;;  %s26_s19 = sadd.s32 1, %s1348_s19   ;;  %s1726_s7 = sld [smem:[#allocation14_spill]] }
 0x4db   : > { %p23_p12 = scmp.ge.s32.totalorder %s26_s19, 10   ;;  %s1727_s15 = sld [smem:[#allocation10_spill]] }
 0x4dc   : > { %s1728_s16 = sld [smem:[#allocation11_spill]]  ;;  %s1731_s30 = smov %s1312_s10 }
 0x4dd   : > { %s1729_s20 = sld [smem:[#allocation12_spill]]  ;;  %s1732_s10 = smov %s1316_s11 }
 0x4de   : > { %s1730_s18 = sld [smem:[#allocation13_spill]]  ;;  %s1733_s11 = smov %s1513_s17 }
 0x4df   : > { %s1734_s12 = smov %s1324_s13  ;;  %s1735_s13 = smov %s1328_s14 }
 0x4e0   : > { %s1736_s14 = smov %s1726_s7  ;;  %25 = sbr.rel (!%p23_p12) target bundleno = 20 (0x14), region = 124 }
 0x4e3   : > { %s1737_s17 = smov %s1729_s20 }
 0x4e5   :  { %907 = vsyncpa [#allocation4], 1 }
 0x4e6   :  { %909 = vsyncpa [#allocation4 + $0x1], 1 }
 0x4e7   :  { %910 = vsyncpa [#allocation6], 1 }
 0x4e8   :  { %912 = vsyncpa [#allocation6 + $0x1], 1 }

</bundles_post_ra>
